<compile_context>
chip_gen: v7x
topology: tpu7x:2x2x1
jax: 0.10.0
libtpu: 0.0.40
codegen_flags: <defaults>
</compile_context>

<pallas_src>
import math

import jax
import jax.numpy as jnp
from jax.experimental import pallas as pl
from jax.experimental.pallas import tpu as pltpu

LANE = 128


def _round_up(x, m):
    return (x + m - 1) // m * m


def _fold_factor(K, N, itemsize, max_weight_bytes=4 << 20):
    """Smallest F such that F*K and F*N are lane-dense (multiples of 128).

    Returns 1 (no folding) when K, N are already lane-dense, or when the
    block-diagonal weight such a fold would require is unreasonably large.
    """
    if K % LANE == 0 and N % LANE == 0:
        return 1
    fk = LANE // math.gcd(K, LANE)
    fn = LANE // math.gcd(N, LANE)
    F = fk * fn // math.gcd(fk, fn)  # lcm(fk, fn)
    if F > 64 or (F * K) * (F * N) * itemsize > max_weight_bytes:
        return 1
    return F


def patch_embed_kernel(x_ref, w_ref, b_ref, o_ref):
    # x_ref: (TM, Kf)  w_ref: (Kf, Nf)  b_ref: (1, Nf)  o_ref: (TM, Nf)
    acc = jnp.dot(x_ref[...], w_ref[...], preferred_element_type=jnp.float32)
    o_ref[...] = (acc + b_ref[...]).astype(o_ref.dtype)


def patch_embed_1d(x, weight, bias, patch_size, *, tile_rows=1024):
    """
    x:      (B, seq_len, in_chans)            float32
    weight: (embed_dim, in_chans, patch_size) float32 (Conv1d weight layout)
    bias:   (embed_dim,)                      float32
    returns (B, num_patches, embed_dim)
    """
    B, seq_len, in_chans = x.shape
    embed_dim = weight.shape[0]
    num_patches = seq_len // patch_size

    M = B * num_patches
    K = patch_size * in_chans
    N = embed_dim
    itemsize = jnp.dtype(x.dtype).itemsize

    # ---- wrapper-side layout plumbing (contiguous reshapes / tiny constants) ----
    # Patch rows; reduction axis ordered (k within patch, channel).
    x_flat = x[:, : num_patches * patch_size, :].reshape(M, K)
    # Conv1d weight (E, C, K) -> (K, C, E) -> (K*C, E), matching x_flat's (k, c) order.
    w_flat = jnp.transpose(weight, (2, 1, 0)).reshape(K, N)

    # Fold F patches per row with a block-diagonal weight so both input (F*K lanes)
    # and output (F*N lanes) slabs are lane-dense.
    F = _fold_factor(K, N, itemsize)
    Kf, Nf = F * K, F * N
    if F > 1:
        eye = jnp.eye(F, dtype=w_flat.dtype)
        # w_big[i*K + k, j*N + n] = (i == j) * w_flat[k, n]
        w_big = jnp.einsum("ij,kn->ikjn", eye, w_flat).reshape(Kf, Nf)
        b_big = jnp.tile(bias, F).reshape(1, Nf)
    else:
        w_big = w_flat
        b_big = bias.reshape(1, Nf)

    # Tile the folded-row axis; pad with zeros to a whole number of tiles.
    Mf = pl.cdiv(M, F)
    TM = min(tile_rows, _round_up(Mf, 8))
    Mf_pad = _round_up(Mf, TM)
    M_pad = Mf_pad * F
    if M_pad != M:
        x_flat = jnp.pad(x_flat, ((0, M_pad - M), (0, 0)))
    x_fold = x_flat.reshape(Mf_pad, Kf)  # contiguous: row r holds patches r*F .. r*F+F-1

    grid = Mf_pad // TM

    # VMEM budget: 2 buffers each for the x / out tiles + the resident weight & bias
    # (their constant index_map means they are DMA'd only once; the duplicate buffer is
    # a small allocation, so pl.Buffered(1) is skipped for simplicity).
    est_vmem = (2 * (TM * Kf + TM * Nf) + 2 * (Kf * Nf + Nf)) * itemsize
    vmem_limit = int(min(max(4 * est_vmem, 16 * 2**20), 48 * 2**20))

    cost = pl.CostEstimate(
        flops=2 * Mf_pad * Kf * Nf,
        transcendentals=0,
        bytes_accessed=(Mf_pad * Kf + Kf * Nf + Mf_pad * Nf) * itemsize,
    )

    out_fold = pl.pallas_call(
        patch_embed_kernel,
        out_shape=jax.ShapeDtypeStruct((Mf_pad, Nf), x.dtype),
        grid_spec=pltpu.PrefetchScalarGridSpec(
            num_scalar_prefetch=0,
            grid=(grid,),
            in_specs=[
                pl.BlockSpec((TM, Kf), lambda i: (i, 0)),   # x tile, pipelined
                pl.BlockSpec((Kf, Nf), lambda i: (0, 0)),   # weight, resident
                pl.BlockSpec((1, Nf), lambda i: (0, 0)),    # bias, resident
            ],
            out_specs=pl.BlockSpec((TM, Nf), lambda i: (i, 0)),
        ),
        compiler_params=pltpu.CompilerParams(
            # M-tiles are independent -> allow megacore sharding on v7x.
            dimension_semantics=("parallel",),
            vmem_limit_bytes=vmem_limit,
        ),
        cost_estimate=cost,
    )(x_fold, w_big, b_big)

    # Un-fold: (Mf_pad, F*N) is a contiguous view of (M_pad, N); drop padding rows.
    out = out_fold.reshape(M_pad, N)[:M]
    return out.reshape(B, num_patches, N)


def patch_embed_1d_ref(x, weight, bias, patch_size):
    """Pure-JAX reference (strided Conv1d semantics)."""
    B, seq_len, in_chans = x.shape
    embed_dim = weight.shape[0]
    num_patches = seq_len // patch_size
    xp = x[:, : num_patches * patch_size, :].reshape(B, num_patches, patch_size, in_chans)
    # out[b,p,e] = sum_{k,c} xp[b,p,k,c] * weight[e,c,k] + bias[e]
    return jnp.einsum("bpkc,eck->bpe", xp, weight) + bias[None, None, :]


if __name__ == "__main__":
    # Module config: seq_len=16, patch_size=4, in_chans=4, embed_dim=32
    B, seq_len, patch_size, in_chans, embed_dim = 2, 16, 4, 4, 32

    key = jax.random.PRNGKey(0)
    kx, kw, kb = jax.random.split(key, 3)

    x = jax.random.normal(kx, (B, seq_len, in_chans), dtype=jnp.float32)
    # Deterministic synthetic Conv1d params (shapes from nn.Conv1d(in_chans, embed_dim, P, P))
    weight = jax.random.normal(kw, (embed_dim, in_chans, patch_size), dtype=jnp.float32) * 0.1
    bias = jax.random.normal(kb, (embed_dim,), dtype=jnp.float32) * 0.1

    out = patch_embed_1d(x, weight, bias, patch_size)
    out = jax.block_until_ready(out)

    ref = patch_embed_1d_ref(x, weight, bias, patch_size)
    assert out.shape == (B, seq_len // patch_size, embed_dim), out.shape
    assert jnp.allclose(out, ref, atol=1e-5, rtol=1e-5), "mismatch vs reference"

    print("KERNEL_OK")
</pallas_src>

<mosaic_0001>
module attributes {stable_mosaic.version = 11 : i64} {
  func.func @patch_embed_kernel(%arg0: i32, %arg1: memref<8x128xf32, #tpu.memory_space<vmem>>, %arg2: memref<128x256xf32, #tpu.memory_space<vmem>>, %arg3: memref<1x256xf32, #tpu.memory_space<vmem>>, %arg4: memref<8x256xf32, #tpu.memory_space<vmem>>) attributes {dimension_semantics = [#tpu.dimension_semantics<parallel>], iteration_bounds = array<i64: 1>, scalar_prefetch = 0 : i64, scratch_operands = 0 : i64, tpu.core_type = #tpu.core_type<tc>, window_params = [{transform_indices = @transform_0, window_bounds = array<i64: 8, 128>}, {pipeline_mode = #tpu.pipeline_mode<synchronous>, transform_indices = @transform_1, window_bounds = array<i64: 128, 256>}, {pipeline_mode = #tpu.pipeline_mode<synchronous>, transform_indices = @transform_2, window_bounds = array<i64: 1, 256>}, {transform_indices = @transform_3, window_bounds = array<i64: 8, 256>}]} {
    %c0 = arith.constant 0 : index
    %c0_0 = arith.constant 0 : index
    %0 = vector.load %arg1[%c0, %c0_0] : memref<8x128xf32, #tpu.memory_space<vmem>>, vector<8x128xf32>
    %c0_1 = arith.constant 0 : index
    %c0_2 = arith.constant 0 : index
    %1 = vector.load %arg2[%c0_1, %c0_2] : memref<128x256xf32, #tpu.memory_space<vmem>>, vector<128x256xf32>
    %cst = arith.constant dense<0.000000e+00> : vector<8x256xf32>
    %2 = tpu.matmul %0, %1, %cst {dimension_numbers = #tpu.dot_dimension_numbers<[1], [0], [0], [1], [0, 0, 1, 1], [], []>} : vector<8x128xf32>, vector<128x256xf32>, vector<8x256xf32> -> vector<8x256xf32>
    %c0_3 = arith.constant 0 : index
    %c0_4 = arith.constant 0 : index
    %3 = vector.load %arg3[%c0_3, %c0_4] : memref<1x256xf32, #tpu.memory_space<vmem>>, vector<1x256xf32>
    %4 = vector.broadcast %3 : vector<1x256xf32> to vector<8x256xf32>
    %5 = arith.addf %2, %4 : vector<8x256xf32>
    %c0_5 = arith.constant 0 : index
    %c0_6 = arith.constant 0 : index
    %6 = vector.load %arg4[%c0_5, %c0_6] : memref<8x256xf32, #tpu.memory_space<vmem>>, vector<8x256xf32>
    tpu.vector_store %arg4[%c0_5, %c0_6], %5 {strides = array<i32>} : memref<8x256xf32, #tpu.memory_space<vmem>>, vector<8x256xf32>,
    return
  }
  func.func @transform_0(%arg0: i32) -> (i32, i32) {
    %c0_i32 = arith.constant 0 : i32
    %c0_i32_0 = arith.constant 0 : i32
    return %arg0, %c0_i32 : i32, i32
  }
  func.func @transform_1(%arg0: i32) -> (i32, i32) {
    %c0_i32 = arith.constant 0 : i32
    %c0_i32_0 = arith.constant 0 : i32
    %c0_i32_1 = arith.constant 0 : i32
    return %c0_i32, %c0_i32_0 : i32, i32
  }
  func.func @transform_2(%arg0: i32) -> (i32, i32) {
    %c0_i32 = arith.constant 0 : i32
    %c0_i32_0 = arith.constant 0 : i32
    %c0_i32_1 = arith.constant 0 : i32
    return %c0_i32, %c0_i32_0 : i32, i32
  }
  func.func @transform_3(%arg0: i32) -> (i32, i32) {
    %c0_i32 = arith.constant 0 : i32
    %c0_i32_0 = arith.constant 0 : i32
    return %arg0, %c0_i32 : i32, i32
  }
}

</mosaic_0001>

<bundles_post_ra>
// kernel: tpu_custom_call.1
= control target key start
LH: loop header
LB: loop body
LE: loop exit
PB: predicated region body
PF: predicated region fallthrough
CT: control target
= control target key end

     0   :  { %8 = vsyncpa [#allocation3], 0  ;;  %s357_s0 = inlined_call_operand.hbm [shape: f32[8,128], index: 0, kind: input, shape index: {}]   ;;  %s358_s1 = inlined_call_operand.hbm [shape: f32[128,256], index: 1, kind: input, shape index: {}]   ;;  %s359_s2 = inlined_call_operand.vmem [shape: f32[1,256], index: 2, kind: input, shape index: {}]   ;;  %s360_s3 = inlined_call_operand.hbm [shape: f32[8,256], index: 3, kind: output, shape index: {}]  }
   0x1   :  { %9 = vsyncpa [#allocation6], 0 }
   0x2   :  { %10 = vsyncpa [#allocation4], 0  ;;  %s285_s12 = smov [#allocation2]   ;;  %s286_s14 = smov [#allocation5]  }
   0x3   :  { %s17_s13 = sshll.u32 %s285_s12, 4  ;;  %s26_s15 = sshll.u32 %s286_s14, 4  ;;  %s18_s13 = int_to_ptr.vmem [resolvable:$true] %s17_s13  ;;  %s311_s15 = int_to_ptr.vmem [resolvable:$true] %s26_s15 }
   0x4   :  { %s213_s18 = scalar_lea.hbm %s357_s0, 128 }
   0x5   :  { %p214_p0 = scmp.ne.s32.totalorder %s357_s0, %s213_s18  ;;  %p217_p1 = scmp.lt.u32.totalorder %s213_s18, %s357_s0 }
   0x7   :  { %p219_p2 = pnand %p217_p1, %p214_p0 }
   0x9   :  { %222 = shalt.err (!%p219_p2)
}
   0xa   :  { %s223_s23 = scalar_lea.vmem %s18_s13, 128  ;;  %p228_p4 = scmp.lt.s32.totalorder %s18_s13, %s18_s13 }
   0xb   :  { %p224_p3 = scmp.ne.s32.totalorder %s18_s13, %s223_s23  ;;  %p229_p5 = scmp.lt.s32.totalorder %s223_s23, %s223_s23 }
   0xd   :  { %p230_p6 = por %p229_p5, %p228_p4 }
   0xf   :  { %p231_p7 = pnand %p230_p6, %p224_p3 }
  0x11   :  { %234 = shalt.err (!%p231_p7)
}
  0x12   :  { %20 = dma.hbm_to_vmem [thread:$0]  %s357_s0, 128, %s18_s13, [#allocation3]  }
  0x13   :  { %s235_s28 = scalar_lea.hbm %s358_s1, 4096 }
  0x14   :  { %p236_p8 = scmp.ne.s32.totalorder %s358_s1, %s235_s28  ;;  %p239_p9 = scmp.lt.u32.totalorder %s235_s28, %s358_s1 }
  0x16   :  { %p241_p10 = pnand %p239_p9, %p236_p8 }
  0x18   :  { %244 = shalt.err (!%p241_p10)
}
  0x19   :  { %s245_s6 = scalar_lea.vmem %s311_s15, 4096  ;;  %p250_p12 = scmp.lt.s32.totalorder %s311_s15, %s311_s15 }
  0x1a   :  { %p246_p11 = scmp.ne.s32.totalorder %s311_s15, %s245_s6  ;;  %p251_p13 = scmp.lt.s32.totalorder %s245_s6, %s245_s6 }
  0x1c   :  { %p252_p0 = por %p251_p13, %p250_p12 }
  0x1e   :  { %p253_p1 = pnand %p252_p0, %p246_p11 }
  0x20   :  { %256 = shalt.err (!%p253_p1)
}
  0x21   :  { %s287_s0 = smov 256   ;;  %s288_s7 = smov 16  }
  0x22   :  { %32 = dma.hbm_to_vmem [thread:$0]  %s358_s1, 4096, %s311_s15, [#allocation6], %s287_s0, %s287_s0, %s288_s7  }
  0x23   :  { %279 = dma.done.wait [#allocation3], 128  }
  0x24   :  { %280 = vsyncadd [#allocation3], 4294967168 }
  0x25   :  { %281 = dma.done.wait [#allocation6], 4096  }
  0x26   :  { %282 = vsyncadd [#allocation6], 4294963200  ;;  %v289_v0 = vmov 0.0   ;;  %v43_v1 = vld [vmem:[#allocation5 + $0x8] sm:$0xff]  ;;  %v45_v2 = vld [vmem:[#allocation5 + $0x18] sm:$0xff]  ;;  %v76_v50 = vlaneseq  ;;  %s290_s11 = smov [#allocation7]  }
  0x27   :  { %150 = vmatprep.mubr.f32.mxu0 %v289_v0  ;;  %v42_v3 = vld [vmem:[#allocation5] sm:$0xff]  ;;  %v175_v4 = vpack.c.bf16 %v45_v2, %v43_v1  ;;  %v44_v5 = vld [vmem:[#allocation5 + $0x10] sm:$0xff]  ;;  %v47_v6 = vld [vmem:[#allocation5 + $0x28] sm:$0xff]  ;;  %s165_s12 = sshll.u32 %s290_s11, 4  ;;  %s166_s12 = int_to_ptr.vmem [resolvable:$true] %s165_s12 }
  0x28   :  { %v49_v7 = vld [vmem:[#allocation5 + $0x38] sm:$0xff]  ;;  %v177_v8 = vpack.c.bf16 %v44_v5, %v42_v3  ;;  %v46_v10 = vld [vmem:[#allocation5 + $0x20] sm:$0xff]  ;;  %v48_v11 = vld [vmem:[#allocation5 + $0x30] sm:$0xff]  ;;  %v77_v51 = vshrl.u32 %v76_v50, 7  ;;  %s257_s13 = scalar_lea.vmem %s166_s12, 256  ;;  %p262_p3 = scmp.lt.s32.totalorder %s166_s12, %s166_s12 }
  0x29   :  { %v179_v9 = vpack.c.bf16 %v49_v7, %v47_v6  ;;  %v51_v12 = vld [vmem:[#allocation5 + $0x48] sm:$0xff]  ;;  %176 = vmatprep.subr.bf16.mxu0 %v175_v4  ;;  %v53_v13 = vld [vmem:[#allocation5 + $0x58] sm:$0xff]  ;;  %v181_v14 = vpack.c.bf16 %v48_v11, %v46_v10  ;;  %v50_v16 = vld [vmem:[#allocation5 + $0x40] sm:$0xff]  ;;  %p258_p2 = scmp.ne.s32.totalorder %s166_s12, %s257_s13  ;;  %p263_p4 = scmp.lt.s32.totalorder %s257_s13, %s257_s13 }
  0x2a   :  { %178 = vmatpush1.bf16.msra.mxu0 %v177_v8  ;;  %v183_v15 = vpack.c.bf16 %v53_v13, %v51_v12  ;;  %v52_v17 = vld [vmem:[#allocation5 + $0x50] sm:$0xff]  ;;  %v55_v18 = vld [vmem:[#allocation5 + $0x68] sm:$0xff]  ;;  %v57_v19 = vld [vmem:[#allocation5 + $0x78] sm:$0xff]  ;;  %v78_v52 = vsub.s32 0, %v77_v51  ;;  %v82_v54 = vsub.s32 1, %v77_v51 }
  0x2b   :  { %180 = vmatprep.subr.bf16.mxu0 %v179_v9  ;;  %v185_v20 = vpack.c.bf16 %v52_v17, %v50_v16  ;;  %v187_v21 = vpack.c.bf16 %v57_v19, %v55_v18  ;;  %v54_v22 = vld [vmem:[#allocation5 + $0x60] sm:$0xff]  ;;  %v56_v23 = vld [vmem:[#allocation5 + $0x70] sm:$0xff]  ;;  %v59_v24 = vld [vmem:[#allocation5 + $0x88] sm:$0xff]  ;;  %p264_p5 = por %p263_p4, %p262_p3 }
  0x2c   :  { %v61_v25 = vld [vmem:[#allocation5 + $0x98] sm:$0xff]  ;;  %v189_v26 = vpack.c.bf16 %v56_v23, %v54_v22  ;;  %v58_v28 = vld [vmem:[#allocation5 + $0x80] sm:$0xff]  ;;  %v60_v29 = vld [vmem:[#allocation5 + $0x90] sm:$0xff] }
  0x2d   :  { %v191_v27 = vpack.c.bf16 %v61_v25, %v59_v24  ;;  %v63_v30 = vld [vmem:[#allocation5 + $0xa8] sm:$0xff]  ;;  %v65_v31 = vld [vmem:[#allocation5 + $0xb8] sm:$0xff]  ;;  %v193_v32 = vpack.c.bf16 %v60_v29, %v58_v28  ;;  %v62_v34 = vld [vmem:[#allocation5 + $0xa0] sm:$0xff]  ;;  %p265_p6 = pnand %p264_p5, %p258_p2 }
  0x2e   :  { %182 = vmatpush1.bf16.msra.mxu0 %v181_v14  ;;  %v195_v33 = vpack.c.bf16 %v65_v31, %v63_v30  ;;  %v64_v35 = vld [vmem:[#allocation5 + $0xb0] sm:$0xff]  ;;  %v67_v36 = vld [vmem:[#allocation5 + $0xc8] sm:$0xff]  ;;  %v69_v37 = vld [vmem:[#allocation5 + $0xd8] sm:$0xff] }
  0x2f   :  { %184 = vmatprep.subr.bf16.mxu0 %v183_v15  ;;  %v197_v38 = vpack.c.bf16 %v64_v35, %v62_v34  ;;  %v199_v39 = vpack.c.bf16 %v69_v37, %v67_v36  ;;  %v66_v40 = vld [vmem:[#allocation5 + $0xc0] sm:$0xff]  ;;  %v68_v41 = vld [vmem:[#allocation5 + $0xd0] sm:$0xff]  ;;  %v71_v42 = vld [vmem:[#allocation5 + $0xe8] sm:$0xff] }
  0x30   :  { %v73_v43 = vld [vmem:[#allocation5 + $0xf8] sm:$0xff]  ;;  %v201_v44 = vpack.c.bf16 %v68_v41, %v66_v40  ;;  %v70_v46 = vld [vmem:[#allocation5 + $0xe0] sm:$0xff]  ;;  %v72_v47 = vld [vmem:[#allocation5 + $0xf0] sm:$0xff] }
  0x31   :  { %v203_v45 = vpack.c.bf16 %v73_v43, %v71_v42  ;;  %v205_v48 = vpack.c.bf16 %v72_v47, %v70_v46  ;;  %v41_v49 = vld [vmem:[#allocation2] sm:$0xff] }
  0x32   :  { %186 = vmatpush1.bf16.msra.mxu0 %v185_v20  ;;  %v74_v53 = vld [vmem:[%s359_s2] sm:$0x3] }
  0x33   :  { %188 = vmatprep.subr.bf16.mxu0 %v187_v21  ;;  %v79_v55 = vrot.slane %v74_v53, %v78_v52  ;;  %v83_v56 = vrot.slane %v74_v53, %v82_v54 }
  0x36   :  { %190 = vmatpush1.bf16.msra.mxu0 %v189_v26 }
  0x37   :  { %192 = vmatprep.subr.bf16.mxu0 %v191_v27 }
  0x3a   :  { %194 = vmatpush1.bf16.msra.mxu0 %v193_v32 }
  0x3b   :  { %196 = vmatprep.subr.bf16.mxu0 %v195_v33 }
  0x3e   :  { %198 = vmatpush1.bf16.msra.mxu0 %v197_v38 }
  0x3f   :  { %200 = vmatprep.subr.bf16.mxu0 %v199_v39 }
  0x42   :  { %202 = vmatpush1.bf16.msra.mxu0 %v201_v44 }
  0x43   :  { %204 = vmatprep.subr.bf16.mxu0 %v203_v45 }
  0x46   :  { %206 = vmatpush1.bf16.msra.mxu0 %v205_v48 }
  0x49   :  { %151 = vmatmul.mubr.f32.vlgmr.msra.gmra.mrb[0].mxu0 %v41_v49 }
 0x11c   :  { %v152_v57 = vpop.f32.mrb[0].mxu0 }
 0x11d   :  { %v153_v58 = vadd.f32 %v152_v57, %v79_v55  ;;  %v154_v59 = vpop.f32.mrb[1].mxu0 }
 0x11e   :  { %v155_v60 = vadd.f32 %v154_v59, %v83_v56 }
 0x11f   :  { %157 = vst [vmem:[#allocation7] sm:$0xff] %v153_v58 }
 0x120   :  { %158 = vst [vmem:[#allocation7 + $0x8] sm:$0xff] %v155_v60 }
 0x121   :  { %268 = shalt.err (!%p265_p6)
}
 0x122   :  { %s269_s15 = scalar_lea.hbm %s360_s3, 256 }
 0x123   :  { %p270_p7 = scmp.ne.s32.totalorder %s360_s3, %s269_s15  ;;  %p273_p8 = scmp.lt.u32.totalorder %s269_s15, %s360_s3 }
 0x125   :  { %p275_p9 = pnand %p273_p8, %p270_p7 }
 0x127   :  { %278 = shalt.err (!%p275_p9)
}
 0x128   :  { %168 = dma.vmem_to_hbm [thread:$0]  %s166_s12, 256, %s360_s3, [#allocation4]  }
 0x129   :  { %283 = dma.done.wait [#allocation4], 256  }
 0x12a   :  { %284 = vsyncadd [#allocation4], 4294967040 }
 0x12b   :  { %172 = vsyncpa [#allocation3], 1 }
 0x12c   :  { %173 = vsyncpa [#allocation6], 1 }
 0x12d   :  { %174 = vsyncpa [#allocation4], 1 }

</bundles_post_ra>
